<compile_context>
chip_gen: v6e
topology: v6e:2x2x1
jax: 0.10.0
libtpu: 0.0.40
codegen_flags: <defaults>
</compile_context>

<pallas_src>
import jax
import jax.numpy as jnp
from jax.experimental import pallas as pl
from jax.experimental.pallas import tpu as pltpu

_BN_EPS = 1e-5


def _dis3_kernel(d_ref, w1_ref, w2_ref, p_ref, o_ref):
    """Whole dis3 forward on a single VMEM-resident block (no grid).

    p_ref rows: 0=gamma1, 1=beta1, 2=gamma2, 3=beta2, 4=w3_row, 5=b3 (bcast).
    """
    p = p_ref[...]
    g1, be1 = p[0:1, :], p[1:2, :]
    g2, be2 = p[2:3, :], p[3:4, :]
    w3_row = p[4:5, :]
    b3 = p[5:6, 0:1]

    def bn_relu(h, g, be):
        # Fused train-mode BatchNorm + relu.  Centered variance (one extra
        # elementwise sweep) avoids E[h^2]-mu^2 cancellation; stats stay f32.
        mu = jnp.mean(h, axis=0, keepdims=True)
        hc = h - mu
        var = jnp.mean(hc * hc, axis=0, keepdims=True)
        scale = g * jax.lax.rsqrt(var + _BN_EPS)      # rsqrt -> EUP slot
        return jnp.maximum(hc * scale + be, 0.0)

    wdt = w1_ref.dtype  # bf16 weights => bf16 MXU operands, f32 accumulation.

    # ---- fc1 on cat(y, x): one K=(Dy+Dx) dot (bias cancelled by train BN),
    #      then bn1 + relu; dropout = identity. ------------------------------
    h = jnp.dot(d_ref[...].astype(wdt), w1_ref[...],
                preferred_element_type=jnp.float32)
    h = bn_relu(h, g1, be1)

    # ---- fc2 (bias cancelled) + bn2 + relu; dropout = identity --------------
    h = jnp.dot(h.astype(wdt), w2_ref[...], preferred_element_type=jnp.float32)
    h = bn_relu(h, g2, be2)

    # ---- fc3 + sigmoid: width-1 output -> VPU/XLU lane reduction, no MXU ----
    logit = jnp.sum(h * w3_row, axis=-1, keepdims=True) + b3
    # (B,1) store: a lane-dense (1,B) layout would need a sublane->lane
    # relayout costing more than the masked store it removes at these sizes.
    o_ref[...] = jax.nn.sigmoid(logit)


def init_dis3_params(key, num_of_output, gan_hidden_dim,
                     weight_dtype=jnp.float32):
    """Deterministic init mimicking PyTorch Linear default (U[+-1/sqrt(fan_in)]).

    fc1/fc2 biases are intentionally NOT created: a bias added immediately
    before train-mode BatchNorm is exactly cancelled by the mean subtraction.
    The small per-feature vectors are packed into one (6, H) f32 array here,
    once, so the forward pass issues a single parameter DMA and no XLA concat.
    """
    ks = jax.random.split(key, 4)

    def lin_w(kw, fan_in, fan_out):
        bound = 1.0 / jnp.sqrt(float(fan_in))
        # stored already transposed: [in, out]
        return jax.random.uniform(kw, (fan_in, fan_out), jnp.float32,
                                  -bound, bound)

    w1 = lin_w(ks[0], num_of_output, gan_hidden_dim).astype(weight_dtype)
    w2 = lin_w(ks[1], gan_hidden_dim, gan_hidden_dim).astype(weight_dtype)
    bound3 = 1.0 / jnp.sqrt(float(gan_hidden_dim))
    w3_row = jax.random.uniform(ks[2], (1, gan_hidden_dim), jnp.float32,
                                -bound3, bound3)        # fc3 weight as a row
    b3 = jax.random.uniform(ks[3], (1, 1), jnp.float32, -bound3, bound3)

    # BatchNorm1d default affine init: gamma=1, beta=0.
    g1 = jnp.ones((1, gan_hidden_dim), jnp.float32)
    be1 = jnp.zeros((1, gan_hidden_dim), jnp.float32)
    g2 = jnp.ones((1, gan_hidden_dim), jnp.float32)
    be2 = jnp.zeros((1, gan_hidden_dim), jnp.float32)

    packed = jnp.concatenate(
        [g1, be1, g2, be2, w3_row, jnp.broadcast_to(b3, (1, gan_hidden_dim))],
        axis=0)                                          # (6, H), f32

    return dict(w1=w1, w2=w2, w3_row=w3_row, b3=b3,
                g1=g1, be1=be1, g2=g2, be2=be2, packed=packed)


@jax.jit
def dis3_forward(y, x, params):
    B = y.shape[0]
    # Tiny wrapper-side cat(y, x): one fused fc1 dot in the kernel, one fewer
    # input DMA descriptor (per review, fixed DMA/MXU costs dominate here).
    d = jnp.concatenate([y, x], axis=1)

    args = (d, params["w1"], params["w2"], params["packed"])
    vmem_spec = pl.BlockSpec(memory_space=pltpu.MemorySpace.VMEM)

    return pl.pallas_call(
        _dis3_kernel,
        out_shape=jax.ShapeDtypeStruct((B, 1), jnp.float32),
        in_specs=[vmem_spec] * len(args),   # whole arrays, no grid, no
        out_specs=vmem_spec,                # double-buffering of a 1-step loop
    )(*args)


def _reference(y, x, params):
    """Pure-JAX reference (same train-mode BN semantics, same weight dtype)."""
    wdt = params["w1"].dtype
    d = jnp.concatenate([y, x], axis=1)

    def bn(r, g, be):
        mu = jnp.mean(r, axis=0, keepdims=True)
        var = jnp.mean((r - mu) ** 2, axis=0, keepdims=True)
        return g * (r - mu) / jnp.sqrt(var + _BN_EPS) + be

    r = jnp.dot(d.astype(wdt), params["w1"], preferred_element_type=jnp.float32)
    r = jnp.maximum(bn(r, params["g1"], params["be1"]), 0.0)
    r = jnp.dot(r.astype(wdt), params["w2"], preferred_element_type=jnp.float32)
    r = jnp.maximum(bn(r, params["g2"], params["be2"]), 0.0)
    r = jnp.dot(r, params["w3_row"].T) + params["b3"]
    return jax.nn.sigmoid(r)


if __name__ == "__main__":
    key = jax.random.PRNGKey(0)
    k_y, k_x, k_p = jax.random.split(key, 3)

    batch = 8
    y_dim = 4
    x_dim = 4
    num_of_output = y_dim + x_dim      # fc1 input dim == dim(cat(y, x))
    gan_hidden_dim = 32
    # pdrop would be e.g. 0.1; dropout applied as identity (see TODO at top).

    y = jax.random.normal(k_y, (batch, y_dim), jnp.float32)
    x = jax.random.normal(k_x, (batch, x_dim), jnp.float32)

    # --- f32 weight path: bit-close to the PyTorch formulation ---------------
    params_f32 = init_dis3_params(k_p, num_of_output, gan_hidden_dim,
                                  weight_dtype=jnp.float32)
    out = jax.block_until_ready(dis3_forward(y, x, params_f32))
    ref = _reference(y, x, params_f32)
    assert out.shape == (batch, 1)
    assert bool(jnp.allclose(out, ref, atol=1e-5, rtol=1e-5)), "f32 mismatch"

    # --- bf16 weight path (perf): halves weight DMA, bf16 MXU, f32 acc -------
    params_bf16 = init_dis3_params(k_p, num_of_output, gan_hidden_dim,
                                   weight_dtype=jnp.bfloat16)
    out16 = jax.block_until_ready(dis3_forward(y, x, params_bf16))
    ref16 = _reference(y, x, params_bf16)
    assert bool(jnp.allclose(out16, ref16, atol=2e-3, rtol=0)), "bf16 mismatch"

    print("KERNEL_OK")
</pallas_src>

<mosaic_0001>
module attributes {stable_mosaic.version = 11 : i64} {
  func.func @_dis3_kernel(%arg0: memref<8x8xf32, #tpu.memory_space<vmem>>, %arg1: memref<8x32xf32, #tpu.memory_space<vmem>>, %arg2: memref<32x32xf32, #tpu.memory_space<vmem>>, %arg3: memref<6x32xf32, #tpu.memory_space<vmem>>, %arg4: memref<8x1xf32, #tpu.memory_space<vmem>>) attributes {dimension_semantics = [], scalar_prefetch = 0 : i64, scratch_operands = 0 : i64, tpu.core_type = #tpu.core_type<tc>} {
    %c0 = arith.constant 0 : index
    %c0_0 = arith.constant 0 : index
    %0 = vector.load %arg3[%c0, %c0_0] : memref<6x32xf32, #tpu.memory_space<vmem>>, vector<6x32xf32>
    %1 = vector.extract_strided_slice %0 {offsets = [0, 0], sizes = [1, 32], strides = [1, 1]} : vector<6x32xf32> to vector<1x32xf32>
    %2 = vector.extract_strided_slice %0 {offsets = [1, 0], sizes = [1, 32], strides = [1, 1]} : vector<6x32xf32> to vector<1x32xf32>
    %3 = vector.extract_strided_slice %0 {offsets = [2, 0], sizes = [1, 32], strides = [1, 1]} : vector<6x32xf32> to vector<1x32xf32>
    %4 = vector.extract_strided_slice %0 {offsets = [3, 0], sizes = [1, 32], strides = [1, 1]} : vector<6x32xf32> to vector<1x32xf32>
    %5 = vector.extract_strided_slice %0 {offsets = [4, 0], sizes = [1, 32], strides = [1, 1]} : vector<6x32xf32> to vector<1x32xf32>
    %6 = vector.extract_strided_slice %0 {offsets = [5, 0], sizes = [1, 1], strides = [1, 1]} : vector<6x32xf32> to vector<1x1xf32>
    %c0_1 = arith.constant 0 : index
    %c0_2 = arith.constant 0 : index
    %7 = vector.load %arg0[%c0_1, %c0_2] : memref<8x8xf32, #tpu.memory_space<vmem>>, vector<8x8xf32>
    %c0_3 = arith.constant 0 : index
    %c0_4 = arith.constant 0 : index
    %8 = vector.load %arg1[%c0_3, %c0_4] : memref<8x32xf32, #tpu.memory_space<vmem>>, vector<8x32xf32>
    %cst = arith.constant dense<0.000000e+00> : vector<8x32xf32>
    %9 = tpu.matmul %7, %8, %cst {dimension_numbers = #tpu.dot_dimension_numbers<[1], [0], [0], [1], [0, 0, 1, 1], [], []>} : vector<8x8xf32>, vector<8x32xf32>, vector<8x32xf32> -> vector<8x32xf32>
    %cst_5 = arith.constant dense<0.000000e+00> : vector<32xf32>
    %10 = vector.multi_reduction <add>, %9, %cst_5 [0] : vector<8x32xf32> to vector<32xf32>
    %11 = vector.shape_cast %10 : vector<32xf32> to vector<1x32xf32>
    %cst_6 = arith.constant 8.000000e+00 : f32
    %12 = vector.broadcast %cst_6 : f32 to vector<1x32xf32>
    %13 = arith.divf %11, %12 : vector<1x32xf32>
    %14 = vector.broadcast %13 : vector<1x32xf32> to vector<8x32xf32>
    %15 = arith.subf %9, %14 : vector<8x32xf32>
    %16 = arith.mulf %15, %15 : vector<8x32xf32>
    %cst_7 = arith.constant dense<0.000000e+00> : vector<32xf32>
    %17 = vector.multi_reduction <add>, %16, %cst_7 [0] : vector<8x32xf32> to vector<32xf32>
    %18 = vector.shape_cast %17 : vector<32xf32> to vector<1x32xf32>
    %cst_8 = arith.constant 8.000000e+00 : f32
    %19 = vector.broadcast %cst_8 : f32 to vector<1x32xf32>
    %20 = arith.divf %18, %19 : vector<1x32xf32>
    %cst_9 = arith.constant 9.99999974E-6 : f32
    %21 = vector.broadcast %cst_9 : f32 to vector<1x32xf32>
    %22 = arith.addf %20, %21 : vector<1x32xf32>
    %23 = math.rsqrt %22 : vector<1x32xf32>
    %24 = arith.mulf %1, %23 : vector<1x32xf32>
    %25 = vector.broadcast %24 : vector<1x32xf32> to vector<8x32xf32>
    %26 = arith.mulf %15, %25 : vector<8x32xf32>
    %27 = vector.broadcast %2 : vector<1x32xf32> to vector<8x32xf32>
    %28 = arith.addf %26, %27 : vector<8x32xf32>
    %cst_10 = arith.constant 0.000000e+00 : f32
    %29 = vector.broadcast %cst_10 : f32 to vector<8x32xf32>
    %30 = arith.maximumf %28, %29 : vector<8x32xf32>
    %c0_11 = arith.constant 0 : index
    %c0_12 = arith.constant 0 : index
    %31 = vector.load %arg2[%c0_11, %c0_12] : memref<32x32xf32, #tpu.memory_space<vmem>>, vector<32x32xf32>
    %cst_13 = arith.constant dense<0.000000e+00> : vector<8x32xf32>
    %32 = tpu.matmul %30, %31, %cst_13 {dimension_numbers = #tpu.dot_dimension_numbers<[1], [0], [0], [1], [0, 0, 1, 1], [], []>} : vector<8x32xf32>, vector<32x32xf32>, vector<8x32xf32> -> vector<8x32xf32>
    %cst_14 = arith.constant dense<0.000000e+00> : vector<32xf32>
    %33 = vector.multi_reduction <add>, %32, %cst_14 [0] : vector<8x32xf32> to vector<32xf32>
    %34 = vector.shape_cast %33 : vector<32xf32> to vector<1x32xf32>
    %cst_15 = arith.constant 8.000000e+00 : f32
    %35 = vector.broadcast %cst_15 : f32 to vector<1x32xf32>
    %36 = arith.divf %34, %35 : vector<1x32xf32>
    %37 = vector.broadcast %36 : vector<1x32xf32> to vector<8x32xf32>
    %38 = arith.subf %32, %37 : vector<8x32xf32>
    %39 = arith.mulf %38, %38 : vector<8x32xf32>
    %cst_16 = arith.constant dense<0.000000e+00> : vector<32xf32>
    %40 = vector.multi_reduction <add>, %39, %cst_16 [0] : vector<8x32xf32> to vector<32xf32>
    %41 = vector.shape_cast %40 : vector<32xf32> to vector<1x32xf32>
    %cst_17 = arith.constant 8.000000e+00 : f32
    %42 = vector.broadcast %cst_17 : f32 to vector<1x32xf32>
    %43 = arith.divf %41, %42 : vector<1x32xf32>
    %cst_18 = arith.constant 9.99999974E-6 : f32
    %44 = vector.broadcast %cst_18 : f32 to vector<1x32xf32>
    %45 = arith.addf %43, %44 : vector<1x32xf32>
    %46 = math.rsqrt %45 : vector<1x32xf32>
    %47 = arith.mulf %3, %46 : vector<1x32xf32>
    %48 = vector.broadcast %47 : vector<1x32xf32> to vector<8x32xf32>
    %49 = arith.mulf %38, %48 : vector<8x32xf32>
    %50 = vector.broadcast %4 : vector<1x32xf32> to vector<8x32xf32>
    %51 = arith.addf %49, %50 : vector<8x32xf32>
    %cst_19 = arith.constant 0.000000e+00 : f32
    %52 = vector.broadcast %cst_19 : f32 to vector<8x32xf32>
    %53 = arith.maximumf %51, %52 : vector<8x32xf32>
    %54 = vector.broadcast %5 : vector<1x32xf32> to vector<8x32xf32>
    %55 = arith.mulf %53, %54 : vector<8x32xf32>
    %cst_20 = arith.constant dense<0.000000e+00> : vector<8xf32>
    %56 = vector.multi_reduction <add>, %55, %cst_20 [1] : vector<8x32xf32> to vector<8xf32>
    %57 = vector.shape_cast %56 : vector<8xf32> to vector<8x1xf32>
    %58 = vector.broadcast %6 : vector<1x1xf32> to vector<8x1xf32>
    %59 = arith.addf %57, %58 : vector<8x1xf32>
    %60 = arith.negf %59 : vector<8x1xf32>
    %61 = math.exp %60 : vector<8x1xf32>
    %cst_21 = arith.constant 1.000000e+00 : f32
    %62 = vector.broadcast %cst_21 : f32 to vector<8x1xf32>
    %63 = arith.addf %62, %61 : vector<8x1xf32>
    %64 = arith.divf %62, %63 : vector<8x1xf32>
    %c0_22 = arith.constant 0 : index
    %c0_23 = arith.constant 0 : index
    %65 = vector.load %arg4[%c0_22, %c0_23] : memref<8x1xf32, #tpu.memory_space<vmem>>, vector<8x1xf32>
    tpu.vector_store %arg4[%c0_22, %c0_23], %64 {strides = array<i32>} : memref<8x1xf32, #tpu.memory_space<vmem>>, vector<8x1xf32>,
    return
  }
}

</mosaic_0001>

<bundles_post_ra>
// kernel: dis3_forward.1
= control target key start
LH: loop header
LB: loop body
LE: loop exit
PB: predicated region body
PF: predicated region fallthrough
CT: control target
= control target key end

     0   :  { %vm20_vm0 = vcmask 64512   ;;  %v298_v0 = vmov 0.0   ;;  %vm299_vm1 = vmmov 0   ;;  %vm94_vm2 = vcmask 261120   ;;  %s355_s1 = inlined_call_operand.vmem [shape: f32[8,32], index: 1, kind: input, shape index: {}]   ;;  %s356_s0 = inlined_call_operand.vmem [shape: f32[8,8], index: 0, kind: input, shape index: {}]   ;;  %s357_s2 = inlined_call_operand.vmem [shape: f32[32,32], index: 2, kind: input, shape index: {}]   ;;  %s358_s3 = inlined_call_operand.vmem [shape: f32[6,32], index: 3, kind: input, shape index: {}]   ;;  %s359_s4 = inlined_call_operand.vmem [shape: f32[8,1], index: 4, kind: output, shape index: {}]  }
   0x1   :  { %272 = vmatprep.subr.mxu0 %v298_v0  ;;  %v19_v1 = vld [vmem:[%s355_s1] sm:$0xff]  ;;  %274 = vmatprep.mubr.msk.f32.mxu0 %vm299_vm1, %v298_v0  ;;  %v131_v3 = vld [vmem:[%s357_s2 + $0x18] sm:$0xff]  ;;  %v130_v4 = vld [vmem:[%s357_s2 + $0x10] sm:$0xff]  ;;  %v117_v28 = vlaneseq  ;;  %vm256_vm3 = vcmask 7168  }
   0x2   :  { %v18_v2 = vld [vmem:[%s356_s0] sm:$0xff]  ;;  %273 = vmatpush3.msra.mxu0 %v19_v1  ;;  %277 = vmatprep.subr.mxu1 %v298_v0  ;;  %v129_v5 = vld [vmem:[%s357_s2 + $0x8] sm:$0xff] }
   0x3   :  { %275 = vmatmul.mubr.msk.f32.vlgmr.msra.gmra.mxu0 %vm20_vm0, %v18_v2  ;;  %285 = vmatprep.mubr.msk.f32.mxu1 %vm299_vm1, %v298_v0  ;;  %v128_v6 = vld [vmem:[%s357_s2] sm:$0xff]  ;;  %v118_v29 = vshrl.u32 %v117_v28, 7 }
   0x4   :  { %278 = vmatpush3.msra.mxu1 %v131_v3  ;;  %v17_v30 = vld [vmem:[%s358_s3] sm:$0x3f] }
   0x5   :  { %279 = vmatprep.subr.mxu1 %v298_v0  ;;  %v119_v31 = vsub.s32 0, %v118_v29  ;;  %v124_v32 = vsub.s32 1, %v118_v29  ;;  %v228_v61 = vsub.s32 2, %v118_v29  ;;  %v233_v62 = vsub.s32 3, %v118_v29 }
   0x6   :  { %280 = vmatpush3.msra.mxu1 %v130_v4  ;;  %v239_v3 = vsub.s32 4, %v118_v29 }
   0x7   :  { %281 = vmatprep.subr.mxu1 %v298_v0  ;;  %v125_v36 = vrot.slane %v17_v30, %v124_v32  ;;  %v234_v2 = vrot.slane %v17_v30, %v233_v62 }
   0x8   :  { %282 = vmatpush3.msra.mxu1 %v129_v5 }
   0x9   :  { %283 = vmatprep.subr.mxu1 %v298_v0 }
   0xa   :  { %284 = vmatpush3.msra.mxu1 %v128_v6  ;;  %v240_v6 = vrot.slane %v17_v30, %v239_v3 }
  0xc3   :  { %v90_v7 = vpop.f32.mrf.mxu0 }
  0xc4   :  { %v95_v8 = vsel %vm94_vm2, %v90_v7, 0.0 }
  0xc5   :  { %v96_v9 = vrot.slane %v95_v8, 4  ;;  %v276_v10 = vpop.f32.mrf.mxu0 }
  0xc6   :  { %v247_v10 = vsub.s32 5, %v118_v29 }
  0xc7   :  { %v97_v11 = vadd.f32 %v96_v9, %v95_v8 }
  0xc9   :  { %v98_v12 = vrot.slane %v97_v11, 2 }
  0xcb   :  { %v99_v13 = vadd.f32 %v98_v12, %v97_v11  ;;  %v248_v11 = vrot.slane %v17_v30, %v247_v10 }
  0xcd   :  { %v100_v14 = vrot.slane %v99_v13, 1 }
  0xcf   :  { %v101_v15 = vadd.f32 %v100_v14, %v99_v13 }
  0xd1   :  { %v103_v16 = vmul.f32 0.125, %v101_v15 }
  0xd3   :  { %v104_v17 = vsub.f32 %v90_v7, %v103_v16 }
  0xd5   :  { %v105_v18 = vmul.f32 %v104_v17, %v104_v17 }
  0xd7   :  { %v106_v19 = vsel %vm94_vm2, %v105_v18, 0.0 }
  0xd8   :  { %v107_v20 = vrot.slane %v106_v19, 4 }
  0xda   :  { %v108_v21 = vadd.f32 %v107_v20, %v106_v19 }
  0xdc   :  { %v109_v22 = vrot.slane %v108_v21, 2 }
  0xde   :  { %v110_v23 = vadd.f32 %v109_v22, %v108_v21 }
  0xe0   :  { %v111_v24 = vrot.slane %v110_v23, 1 }
  0xe2   :  { %v112_v25 = vadd.f32 %v111_v24, %v110_v23 }
  0xe4   :  { %v113_v26 = vmul.f32 0.125, %v112_v25 }
  0xe6   :  { %v114_v27 = vadd.f32 1e-05, %v113_v26 }
  0xe8   :  { %290 = vrsqrt.f32 %v114_v27 }
  0xf5   :  { %v291_v33 = vpop.eup %290 }
  0xf6   :  { %v116_v34 = vmul.f32 %v291_v33, %v17_v30 }
  0xf8   :  { %v120_v35 = vrot.slane %v116_v34, %v119_v31 }
  0xfa   :  { %v121_v37 = vmul.f32 %v120_v35, %v104_v17 }
  0xfc   :  { %v126_v38 = vadd.f32 %v125_v36, %v121_v37 }
  0xfe   :  { %v127_v39 = vmax.f32 %v126_v38, 0.0 }
 0x100   :  { %286 = vmatmul.mubr.msk.f32.vlgmr.msra.gmra.mxu1 %vm94_vm2, %v127_v39 }
 0x1c0   :  { %v201_v40 = vpop.f32.mrf.mxu1 }
 0x1c1   :  { %v205_v41 = vsel %vm94_vm2, %v201_v40, 0.0 }
 0x1c2   :  { %v206_v42 = vrot.slane %v205_v41, 4  ;;  %v287_v43 = vpop.f32.mrf.mxu1 }
 0x1c4   :  { %v207_v44 = vadd.f32 %v206_v42, %v205_v41 }
 0x1c6   :  { %v208_v45 = vrot.slane %v207_v44, 2 }
 0x1c8   :  { %v209_v46 = vadd.f32 %v208_v45, %v207_v44 }
 0x1ca   :  { %v210_v47 = vrot.slane %v209_v46, 1 }
 0x1cc   :  { %v211_v48 = vadd.f32 %v210_v47, %v209_v46 }
 0x1ce   :  { %v212_v49 = vmul.f32 0.125, %v211_v48 }
 0x1d0   :  { %v213_v50 = vsub.f32 %v201_v40, %v212_v49 }
 0x1d2   :  { %v214_v51 = vmul.f32 %v213_v50, %v213_v50 }
 0x1d4   :  { %v215_v52 = vsel %vm94_vm2, %v214_v51, 0.0 }
 0x1d5   :  { %v216_v53 = vrot.slane %v215_v52, 4 }
 0x1d7   :  { %v217_v54 = vadd.f32 %v216_v53, %v215_v52 }
 0x1d9   :  { %v218_v55 = vrot.slane %v217_v54, 2 }
 0x1db   :  { %v219_v56 = vadd.f32 %v218_v55, %v217_v54 }
 0x1dd   :  { %v220_v57 = vrot.slane %v219_v56, 1 }
 0x1df   :  { %v221_v58 = vadd.f32 %v220_v57, %v219_v56 }
 0x1e1   :  { %v222_v59 = vmul.f32 0.125, %v221_v58 }
 0x1e3   :  { %v223_v60 = vadd.f32 1e-05, %v222_v59 }
 0x1e5   :  { %292 = vrsqrt.f32 %v223_v60 }
 0x1f2   :  { %v293_v63 = vpop.eup %292 }
 0x1f3   :  { %v225_v0 = vmul.f32 %v293_v63, %v17_v30 }
 0x1f5   :  { %v229_v1 = vrot.slane %v225_v0, %v228_v61 }
 0x1f7   :  { %v230_v4 = vmul.f32 %v229_v1, %v213_v50 }
 0x1f9   :  { %v235_v5 = vadd.f32 %v234_v2, %v230_v4 }
 0x1fb   :  { %v236_v7 = vmax.f32 %v235_v5, 0.0 }
 0x1fd   :  { %v241_v8 = vmul.f32 %v240_v6, %v236_v7 }
 0x1ff   :  { %v242_v9 = vsel %vm94_vm2, %v241_v8, 0.0 }
 0x200   :  { %243 = vadd.xlane.f32.xlu0 %v242_v9 }
 0x289   :  { %v244_v12 = vpop.xlane.xlu0 %243 }
 0x28a   :  { %v249_v13 = vadd.f32 %v248_v11, %v244_v12 }
 0x28c   :  { %v264_v14 = vmul.f32 -1.442695, %v249_v13 }
 0x28e   :  { %294 = vpow2.f32 %v264_v14 }
 0x29b   :  { %v295_v15 = vpop.eup %294 }
 0x29c   :  { %v253_v16 = vadd.f32 1.0, %v295_v15 }
 0x29e   :  { %296 = vrcp.f32 %v253_v16 }
 0x2ab   :  { %v297_v17 = vpop.eup %296 }
 0x2ac   :  { %257 = vst.msk [vmem:[%s359_s4] sm:$0xff] %vm256_vm3, %v297_v17 }

</bundles_post_ra>
